<compile_context>
chip_gen: v7x
topology: tpu7x:2x2x1
jax: 0.10.0
libtpu: 0.0.40
codegen_flags: <defaults>
</compile_context>

<pallas_src>
import functools
import math

import jax
import jax.numpy as jnp
from jax.experimental import pallas as pl
from jax.experimental.pallas import tpu as pltpu


def coord_att_kernel(x_ref, pool_ref, eh_ref, ew_ref,
                     w1_ref, b1_ref, w2_ref, b2_ref, out_ref, *, H, BO):
    f32 = jnp.float32

    # Coordinate pooling for every (image, channel) row of the slab:
    # pooled = [mean over W | mean over H]  -> (B*C, H+W), one MXU matmul.
    pooled = jnp.dot(x_ref[...], pool_ref[...], preferred_element_type=f32)

    # conv1 (1x1, eval-mode BN folded) for all images at once via the constant
    # block-diagonal weight, then h_swish.                       (B*MIP, H+W)
    y = jnp.dot(w1_ref[...], pooled, preferred_element_type=f32) + b1_ref[...]
    y = y * (jnp.clip(y + 3.0, 0.0, 6.0) * (1.0 / 6.0))

    # conv_h and conv_w stacked into one block-diagonal matmul.
    # Rows [:BO] are the h-branch, rows [BO:] the w-branch.      (2*B*OUP, H+W)
    z = jnp.dot(w2_ref[...], y, preferred_element_type=f32) + b2_ref[...]
    a_h = jax.nn.sigmoid(z[:BO, :H])          # (B*OUP, H)
    a_w = jax.nn.sigmoid(z[BO:, H:])          # (B*OUP, W)

    # Broadcast the gates back to the flat spatial axis with indicator
    # matmuls (MXU is otherwise idle; avoids cross-lane reshapes).  (B*C, H*W)
    gate_h = jnp.dot(a_h, eh_ref[...], preferred_element_type=f32)
    gate_w = jnp.dot(a_w, ew_ref[...], preferred_element_type=f32)

    # Final gating multiply + one dense slab store.
    out_ref[...] = (x_ref[...] * gate_h * gate_w).astype(out_ref.dtype)


def _gen_params():
    """(vmem_limit_bytes, per-step tile budget, preferred min grid steps)."""
    kind = ""
    try:
        kind = jax.devices()[0].device_kind.lower()
    except Exception:
        pass
    if "v7" in kind or "7x" in kind:
        return 48 * 2**20, 10 * 2**20, 4      # 64 MiB physical VMEM
    if "v5" in kind or "v6" in kind:
        return 100 * 2**20, 20 * 2**20, 2     # 128 MiB physical VMEM
    return 32 * 2**20, 8 * 2**20, 2           # conservative fallback


def _pick_b_blk(N, C, itemsize, HW, tile_budget, min_steps):
    align = 8 // math.gcd(C, 8)          # smallest b_blk with (b_blk*C) % 8 == 0
    per_image = C * HW * itemsize
    cap_tile = max(1, tile_budget // (2 * per_image))   # in + out slab per step
    cap_mxu = max(1, 256 // C)           # keep block-diag conv matmuls ~1 MXU tile
    b = max(1, min(N, cap_tile, cap_mxu))
    if b >= align:
        b = (b // align) * align
        # Prefer >= min_steps grid steps (megacore / per-core double buffering).
        if -(-N // b) < min_steps and b > align:
            b_alt = ((-(-N // min_steps) + align - 1) // align) * align
            b = max(align, min(b, b_alt))
    return b


def coord_att(x, params, *, b_blk=None):
    N, C, H, W = x.shape
    HW = H * W
    L = H + W
    w1, b1, bns, bnb, wh, bh, ww, bw = params
    MIP = w1.shape[0]
    OUP = wh.shape[0]
    assert OUP == C, "CoordAtt requires oup == inp for the gating multiply"

    f32 = jnp.float32
    # Fold eval-mode BatchNorm2d into conv1.
    w1p = (bns * w1).astype(f32)              # (MIP, C)
    b1p = (bns * b1 + bnb).astype(f32)        # (MIP, 1)

    vmem_limit, tile_budget, min_steps = _gen_params()
    if b_blk is None:
        b_blk = _pick_b_blk(N, C, x.dtype.itemsize, HW, tile_budget, min_steps)
    b_blk = max(1, min(b_blk, N))
    if (b_blk * C) % 8 != 0 and b_blk != N:
        b_blk = N                              # single full block is always legal
    steps = -(-N // b_blk)
    N_pad = steps * b_blk

    BC = b_blk * C
    BM = b_blk * MIP
    BO = b_blk * OUP

    # Constant pooling / broadcast matrices (resident in VMEM across steps).
    s = jnp.arange(HW)
    onehot_h = (s[:, None] // W == jnp.arange(H)[None, :]).astype(f32)    # (HW, H)
    onehot_w = (s[:, None] % W == jnp.arange(W)[None, :]).astype(f32)     # (HW, W)
    pool = jnp.concatenate([onehot_h / W, onehot_w / H], axis=1)          # (HW, L)
    pool = pool.astype(x.dtype)    # big pooling matmul stays in activation dtype
    eh = onehot_h.T                                                       # (H, HW)
    ew = onehot_w.T                                                       # (W, HW)

    # Block-diagonal per-slab conv weights + pre-broadcast (hoisted) biases.
    eye_b = jnp.eye(b_blk, dtype=f32)
    w1bd = jnp.kron(eye_b, w1p)                                           # (BM, BC)
    b1bd = jnp.broadcast_to(jnp.tile(b1p, (b_blk, 1)), (BM, L))           # (BM, L)
    w2bd = jnp.concatenate([jnp.kron(eye_b, wh.astype(f32)),
                            jnp.kron(eye_b, ww.astype(f32))], axis=0)     # (2BO, BM)
    b2bd = jnp.broadcast_to(
        jnp.concatenate([jnp.tile(bh.astype(f32), (b_blk, 1)),
                         jnp.tile(bw.astype(f32), (b_blk, 1))], axis=0),
        (2 * BO, L))                                                      # (2BO, L)

    x2d = x.reshape(N * C, HW)                 # lane-dense, free reshape in HBM
    if N_pad != N:
        x2d = jnp.pad(x2d, ((0, (N_pad - N) * C), (0, 0)))

    def const_spec(shape):
        nd = len(shape)
        return pl.BlockSpec(shape, lambda n, _nd=nd: (0,) * _nd)

    kernel = functools.partial(coord_att_kernel, H=H, BO=BO)

    out2d = pl.pallas_call(
        kernel,
        out_shape=jax.ShapeDtypeStruct((N_pad * C, HW), x.dtype),
        grid_spec=pltpu.PrefetchScalarGridSpec(
            num_scalar_prefetch=0,
            grid=(steps,),
            in_specs=[
                pl.BlockSpec((BC, HW), lambda n: (n, 0)),
                const_spec((HW, L)),
                const_spec((H, HW)),
                const_spec((W, HW)),
                const_spec((BM, BC)),
                const_spec((BM, L)),
                const_spec((2 * BO, BM)),
                const_spec((2 * BO, L)),
            ],
            out_specs=pl.BlockSpec((BC, HW), lambda n: (n, 0)),
        ),
        compiler_params=pltpu.CompilerParams(
            dimension_semantics=("parallel",),
            vmem_limit_bytes=vmem_limit,
        ),
    )(x2d, pool, eh, ew, w1bd, b1bd, w2bd, b2bd)

    return out2d[: N * C].reshape(N, C, H, W)


def coord_att_reference(x, params):
    """Pure-JAX reference mirroring the PyTorch forward (eval-mode BN)."""
    w1, b1, bns, bnb, wh, bh, ww, bw = params
    xf = x.astype(jnp.float32)
    x_h = jnp.mean(xf, axis=3)                          # (N, C, H)
    x_w = jnp.mean(xf, axis=2)                          # (N, C, W)

    def cba(t):                                         # (N, C, L) -> (N, MIP, L)
        y = jnp.einsum('mc,ncl->nml', w1, t) + b1[None]
        y = y * bns[None] + bnb[None]
        return y * jnp.clip(y + 3.0, 0.0, 6.0) / 6.0

    y_h = cba(x_h)
    y_w = cba(x_w)
    a_h = 1.0 / (1.0 + jnp.exp(-(jnp.einsum('om,nml->nol', wh, y_h) + bh[None])))
    a_w = 1.0 / (1.0 + jnp.exp(-(jnp.einsum('om,nml->nol', ww, y_w) + bw[None])))
    out = xf * a_w[:, :, None, :] * a_h[:, :, :, None]
    return out.astype(x.dtype)


if __name__ == "__main__":
    # Shapes implied by the module: NCHW input, inp == oup == C.
    N, C, H, W = 2, 4, 16, 16
    reduction = 32
    MIP = max(8, C // reduction)   # = 8
    OUP = C

    key = jax.random.PRNGKey(0)
    keys = jax.random.split(key, 12)

    x = jax.random.normal(keys[0], (N, C, H, W), dtype=jnp.float32)

    # conv1 (1x1, C -> MIP) + BatchNorm2d(MIP) (eval mode) + h_swish
    w1 = jax.random.normal(keys[1], (MIP, C), dtype=jnp.float32) * 0.3
    b1 = jax.random.normal(keys[2], (MIP, 1), dtype=jnp.float32) * 0.1
    bn_gamma = 1.0 + 0.1 * jax.random.normal(keys[3], (MIP, 1), dtype=jnp.float32)
    bn_beta = 0.1 * jax.random.normal(keys[4], (MIP, 1), dtype=jnp.float32)
    bn_mean = 0.1 * jax.random.normal(keys[5], (MIP, 1), dtype=jnp.float32)
    bn_var = 0.5 + jax.random.uniform(keys[6], (MIP, 1), dtype=jnp.float32)
    eps = 1e-5
    bns = bn_gamma / jnp.sqrt(bn_var + eps)
    bnb = bn_beta - bn_mean * bns

    # conv_h / conv_w (1x1, MIP -> OUP)
    wh = jax.random.normal(keys[7], (OUP, MIP), dtype=jnp.float32) * 0.3
    bh = jax.random.normal(keys[8], (OUP, 1), dtype=jnp.float32) * 0.1
    ww = jax.random.normal(keys[9], (OUP, MIP), dtype=jnp.float32) * 0.3
    bw = jax.random.normal(keys[10], (OUP, 1), dtype=jnp.float32) * 0.1

    # TODO(synk): BatchNorm2d training-mode batch statistics are not modeled;
    # eval-mode running stats are folded into conv1 (standard inference path).
    params = (w1, b1, bns, bnb, wh, bh, ww, bw)

    out = coord_att(x, params)
    out = jax.block_until_ready(out)

    ref = coord_att_reference(x, params)
    assert out.shape == (N, C, H, W)
    assert jnp.allclose(out, ref, atol=1e-4, rtol=1e-4), "mismatch vs reference"

    print("KERNEL_OK")
</pallas_src>

<mosaic_0001>
module attributes {stable_mosaic.version = 11 : i64} {
  func.func @coord_att_kernel(%arg0: i32, %arg1: memref<8x256xf32, #tpu.memory_space<vmem>>, %arg2: memref<256x32xf32, #tpu.memory_space<vmem>>, %arg3: memref<16x256xf32, #tpu.memory_space<vmem>>, %arg4: memref<16x256xf32, #tpu.memory_space<vmem>>, %arg5: memref<16x8xf32, #tpu.memory_space<vmem>>, %arg6: memref<16x32xf32, #tpu.memory_space<vmem>>, %arg7: memref<16x16xf32, #tpu.memory_space<vmem>>, %arg8: memref<16x32xf32, #tpu.memory_space<vmem>>, %arg9: memref<8x256xf32, #tpu.memory_space<vmem>>) attributes {dimension_semantics = [#tpu.dimension_semantics<parallel>], iteration_bounds = array<i64: 1>, scalar_prefetch = 0 : i64, scratch_operands = 0 : i64, tpu.core_type = #tpu.core_type<tc>, window_params = [{transform_indices = @transform_0, window_bounds = array<i64: 8, 256>}, {pipeline_mode = #tpu.pipeline_mode<synchronous>, transform_indices = @transform_1, window_bounds = array<i64: 256, 32>}, {pipeline_mode = #tpu.pipeline_mode<synchronous>, transform_indices = @transform_2, window_bounds = array<i64: 16, 256>}, {pipeline_mode = #tpu.pipeline_mode<synchronous>, transform_indices = @transform_3, window_bounds = array<i64: 16, 256>}, {pipeline_mode = #tpu.pipeline_mode<synchronous>, transform_indices = @transform_4, window_bounds = array<i64: 16, 8>}, {pipeline_mode = #tpu.pipeline_mode<synchronous>, transform_indices = @transform_5, window_bounds = array<i64: 16, 32>}, {pipeline_mode = #tpu.pipeline_mode<synchronous>, transform_indices = @transform_6, window_bounds = array<i64: 16, 16>}, {pipeline_mode = #tpu.pipeline_mode<synchronous>, transform_indices = @transform_7, window_bounds = array<i64: 16, 32>}, {transform_indices = @transform_8, window_bounds = array<i64: 8, 256>}]} {
    %c0 = arith.constant 0 : index
    %c0_0 = arith.constant 0 : index
    %0 = vector.load %arg1[%c0, %c0_0] : memref<8x256xf32, #tpu.memory_space<vmem>>, vector<8x256xf32>
    %c0_1 = arith.constant 0 : index
    %c0_2 = arith.constant 0 : index
    %1 = vector.load %arg2[%c0_1, %c0_2] : memref<256x32xf32, #tpu.memory_space<vmem>>, vector<256x32xf32>
    %cst = arith.constant dense<0.000000e+00> : vector<8x32xf32>
    %2 = tpu.matmul %0, %1, %cst {dimension_numbers = #tpu.dot_dimension_numbers<[1], [0], [0], [1], [0, 0, 1, 1], [], []>} : vector<8x256xf32>, vector<256x32xf32>, vector<8x32xf32> -> vector<8x32xf32>
    %c0_3 = arith.constant 0 : index
    %c0_4 = arith.constant 0 : index
    %3 = vector.load %arg5[%c0_3, %c0_4] : memref<16x8xf32, #tpu.memory_space<vmem>>, vector<16x8xf32>
    %cst_5 = arith.constant dense<0.000000e+00> : vector<16x32xf32>
    %4 = tpu.matmul %3, %2, %cst_5 {dimension_numbers = #tpu.dot_dimension_numbers<[1], [0], [0], [1], [0, 0, 1, 1], [], []>} : vector<16x8xf32>, vector<8x32xf32>, vector<16x32xf32> -> vector<16x32xf32>
    %c0_6 = arith.constant 0 : index
    %c0_7 = arith.constant 0 : index
    %5 = vector.load %arg6[%c0_6, %c0_7] : memref<16x32xf32, #tpu.memory_space<vmem>>, vector<16x32xf32>
    %6 = arith.addf %4, %5 : vector<16x32xf32>
    %cst_8 = arith.constant 3.000000e+00 : f32
    %7 = vector.broadcast %cst_8 : f32 to vector<16x32xf32>
    %8 = arith.addf %6, %7 : vector<16x32xf32>
    %cst_9 = arith.constant 0.000000e+00 : f32
    %cst_10 = arith.constant 6.000000e+00 : f32
    %9 = vector.broadcast %cst_9 : f32 to vector<16x32xf32>
    %10 = arith.maximumf %9, %8 : vector<16x32xf32>
    %11 = vector.broadcast %cst_10 : f32 to vector<16x32xf32>
    %12 = arith.minimumf %11, %10 : vector<16x32xf32>
    %cst_11 = arith.constant 0.166666672 : f32
    %13 = vector.broadcast %cst_11 : f32 to vector<16x32xf32>
    %14 = arith.mulf %12, %13 : vector<16x32xf32>
    %15 = arith.mulf %6, %14 : vector<16x32xf32>
    %c0_12 = arith.constant 0 : index
    %c0_13 = arith.constant 0 : index
    %16 = vector.load %arg7[%c0_12, %c0_13] : memref<16x16xf32, #tpu.memory_space<vmem>>, vector<16x16xf32>
    %cst_14 = arith.constant dense<0.000000e+00> : vector<16x32xf32>
    %17 = tpu.matmul %16, %15, %cst_14 {dimension_numbers = #tpu.dot_dimension_numbers<[1], [0], [0], [1], [0, 0, 1, 1], [], []>} : vector<16x16xf32>, vector<16x32xf32>, vector<16x32xf32> -> vector<16x32xf32>
    %c0_15 = arith.constant 0 : index
    %c0_16 = arith.constant 0 : index
    %18 = vector.load %arg8[%c0_15, %c0_16] : memref<16x32xf32, #tpu.memory_space<vmem>>, vector<16x32xf32>
    %19 = arith.addf %17, %18 : vector<16x32xf32>
    %20 = vector.extract_strided_slice %19 {offsets = [0, 0], sizes = [8, 16], strides = [1, 1]} : vector<16x32xf32> to vector<8x16xf32>
    %21 = arith.negf %20 : vector<8x16xf32>
    %22 = math.exp %21 : vector<8x16xf32>
    %cst_17 = arith.constant 1.000000e+00 : f32
    %23 = vector.broadcast %cst_17 : f32 to vector<8x16xf32>
    %24 = arith.addf %23, %22 : vector<8x16xf32>
    %25 = arith.divf %23, %24 : vector<8x16xf32>
    %26 = vector.extract_strided_slice %19 {offsets = [8, 16], sizes = [8, 16], strides = [1, 1]} : vector<16x32xf32> to vector<8x16xf32>
    %27 = arith.negf %26 : vector<8x16xf32>
    %28 = math.exp %27 : vector<8x16xf32>
    %cst_18 = arith.constant 1.000000e+00 : f32
    %29 = vector.broadcast %cst_18 : f32 to vector<8x16xf32>
    %30 = arith.addf %29, %28 : vector<8x16xf32>
    %31 = arith.divf %29, %30 : vector<8x16xf32>
    %c0_19 = arith.constant 0 : index
    %c0_20 = arith.constant 0 : index
    %32 = vector.load %arg3[%c0_19, %c0_20] : memref<16x256xf32, #tpu.memory_space<vmem>>, vector<16x256xf32>
    %cst_21 = arith.constant dense<0.000000e+00> : vector<8x256xf32>
    %33 = tpu.matmul %25, %32, %cst_21 {dimension_numbers = #tpu.dot_dimension_numbers<[1], [0], [0], [1], [0, 0, 1, 1], [], []>} : vector<8x16xf32>, vector<16x256xf32>, vector<8x256xf32> -> vector<8x256xf32>
    %c0_22 = arith.constant 0 : index
    %c0_23 = arith.constant 0 : index
    %34 = vector.load %arg4[%c0_22, %c0_23] : memref<16x256xf32, #tpu.memory_space<vmem>>, vector<16x256xf32>
    %cst_24 = arith.constant dense<0.000000e+00> : vector<8x256xf32>
    %35 = tpu.matmul %31, %34, %cst_24 {dimension_numbers = #tpu.dot_dimension_numbers<[1], [0], [0], [1], [0, 0, 1, 1], [], []>} : vector<8x16xf32>, vector<16x256xf32>, vector<8x256xf32> -> vector<8x256xf32>
    %c0_25 = arith.constant 0 : index
    %c0_26 = arith.constant 0 : index
    %36 = vector.load %arg1[%c0_25, %c0_26] : memref<8x256xf32, #tpu.memory_space<vmem>>, vector<8x256xf32>
    %37 = arith.mulf %36, %33 : vector<8x256xf32>
    %38 = arith.mulf %37, %35 : vector<8x256xf32>
    %c0_27 = arith.constant 0 : index
    %c0_28 = arith.constant 0 : index
    %39 = vector.load %arg9[%c0_27, %c0_28] : memref<8x256xf32, #tpu.memory_space<vmem>>, vector<8x256xf32>
    tpu.vector_store %arg9[%c0_27, %c0_28], %38 {strides = array<i32>} : memref<8x256xf32, #tpu.memory_space<vmem>>, vector<8x256xf32>,
    return
  }
  func.func @transform_0(%arg0: i32) -> (i32, i32) {
    %c0_i32 = arith.constant 0 : i32
    %c0_i32_0 = arith.constant 0 : i32
    return %arg0, %c0_i32 : i32, i32
  }
  func.func @transform_1(%arg0: i32) -> (i32, i32) {
    %c0_i32 = arith.constant 0 : i32
    %c0_i32_0 = arith.constant 0 : i32
    %c0_i32_1 = arith.constant 0 : i32
    return %c0_i32, %c0_i32_0 : i32, i32
  }
  func.func @transform_2(%arg0: i32) -> (i32, i32) {
    %c0_i32 = arith.constant 0 : i32
    %c0_i32_0 = arith.constant 0 : i32
    %c0_i32_1 = arith.constant 0 : i32
    return %c0_i32, %c0_i32_0 : i32, i32
  }
  func.func @transform_3(%arg0: i32) -> (i32, i32) {
    %c0_i32 = arith.constant 0 : i32
    %c0_i32_0 = arith.constant 0 : i32
    %c0_i32_1 = arith.constant 0 : i32
    return %c0_i32, %c0_i32_0 : i32, i32
  }
  func.func @transform_4(%arg0: i32) -> (i32, i32) {
    %c0_i32 = arith.constant 0 : i32
    %c0_i32_0 = arith.constant 0 : i32
    %c0_i32_1 = arith.constant 0 : i32
    return %c0_i32, %c0_i32_0 : i32, i32
  }
  func.func @transform_5(%arg0: i32) -> (i32, i32) {
    %c0_i32 = arith.constant 0 : i32
    %c0_i32_0 = arith.constant 0 : i32
    %c0_i32_1 = arith.constant 0 : i32
    return %c0_i32, %c0_i32_0 : i32, i32
  }
  func.func @transform_6(%arg0: i32) -> (i32, i32) {
    %c0_i32 = arith.constant 0 : i32
    %c0_i32_0 = arith.constant 0 : i32
    %c0_i32_1 = arith.constant 0 : i32
    return %c0_i32, %c0_i32_0 : i32, i32
  }
  func.func @transform_7(%arg0: i32) -> (i32, i32) {
    %c0_i32 = arith.constant 0 : i32
    %c0_i32_0 = arith.constant 0 : i32
    %c0_i32_1 = arith.constant 0 : i32
    return %c0_i32, %c0_i32_0 : i32, i32
  }
  func.func @transform_8(%arg0: i32) -> (i32, i32) {
    %c0_i32 = arith.constant 0 : i32
    %c0_i32_0 = arith.constant 0 : i32
    return %arg0, %c0_i32 : i32, i32
  }
}

</mosaic_0001>

<bundles_post_ra>
// kernel: tpu_custom_call.1
= control target key start
LH: loop header
LB: loop body
LE: loop exit
PB: predicated region body
PF: predicated region fallthrough
CT: control target
= control target key end

     0   :  { %s869_s0 = inlined_call_operand.vmem [shape: f32[8,256], index: 0, kind: input, shape index: {}]   ;;  %s870_s1 = inlined_call_operand.vmem [shape: f32[256,32], index: 1, kind: input, shape index: {}]   ;;  %s871_s2 = inlined_call_operand.vmem [shape: f32[16,256], index: 2, kind: input, shape index: {}]   ;;  %s872_s3 = inlined_call_operand.vmem [shape: f32[16,256], index: 3, kind: input, shape index: {}]   ;;  %s873_s4 = inlined_call_operand.vmem [shape: f32[16,8], index: 4, kind: input, shape index: {}]   ;;  %s874_s5 = inlined_call_operand.vmem [shape: f32[16,32], index: 5, kind: input, shape index: {}]   ;;  %s875_s6 = inlined_call_operand.vmem [shape: f32[16,16], index: 6, kind: input, shape index: {}]   ;;  %s876_s7 = inlined_call_operand.vmem [shape: f32[16,32], index: 7, kind: input, shape index: {}]   ;;  %s877_s8 = inlined_call_operand.hbm [shape: f32[8,256], index: 8, kind: output, shape index: {}]  }
   0x1   :  { %v48_v0 = vld [vmem:[%s870_s1 + $0x80] sm:$0xff]  ;;  %v49_v1 = vld [vmem:[%s870_s1 + $0x88] sm:$0xff]  ;;  %v50_v5 = vld [vmem:[%s870_s1 + $0x90] sm:$0xff] }
   0x2   :  { %v32_v2 = vld [vmem:[%s870_s1] sm:$0xff]  ;;  %v568_v3 = vpack.c.bf16 %v49_v1, %v48_v0  ;;  %v33_v4 = vld [vmem:[%s870_s1 + $0x8] sm:$0xff]  ;;  %v51_v6 = vld [vmem:[%s870_s1 + $0x98] sm:$0xff] }
   0x3   :  { %v570_v7 = vpack.c.bf16 %v33_v4, %v32_v2  ;;  %v572_v8 = vpack.c.bf16 %v51_v6, %v50_v5  ;;  %v34_v9 = vld [vmem:[%s870_s1 + $0x10] sm:$0xff]  ;;  %v35_v10 = vld [vmem:[%s870_s1 + $0x18] sm:$0xff]  ;;  %v52_v11 = vld [vmem:[%s870_s1 + $0xa0] sm:$0xff] }
   0x4   :  { %569 = vmatprep.subr.bf16.mxu0 %v568_v3  ;;  %v53_v12 = vld [vmem:[%s870_s1 + $0xa8] sm:$0xff]  ;;  %v574_v13 = vpack.c.bf16 %v35_v10, %v34_v9  ;;  %v36_v15 = vld [vmem:[%s870_s1 + $0x20] sm:$0xff]  ;;  %v54_v17 = vld [vmem:[%s870_s1 + $0xb0] sm:$0xff] }
   0x5   :  { %571 = vmatpush3.bf16.msra.mxu0 %v570_v7  ;;  %v576_v14 = vpack.c.bf16 %v53_v12, %v52_v11  ;;  %v37_v16 = vld [vmem:[%s870_s1 + $0x28] sm:$0xff]  ;;  %v55_v18 = vld [vmem:[%s870_s1 + $0xb8] sm:$0xff]  ;;  %v38_v21 = vld [vmem:[%s870_s1 + $0x30] sm:$0xff] }
   0x6   :  { %573 = vmatprep.subr.bf16.mxu0 %v572_v8  ;;  %v578_v19 = vpack.c.bf16 %v37_v16, %v36_v15  ;;  %v580_v20 = vpack.c.bf16 %v55_v18, %v54_v17  ;;  %v39_v22 = vld [vmem:[%s870_s1 + $0x38] sm:$0xff]  ;;  %v56_v23 = vld [vmem:[%s870_s1 + $0xc0] sm:$0xff]  ;;  %v57_v24 = vld [vmem:[%s870_s1 + $0xc8] sm:$0xff] }
   0x7   :  { %v752_v25 = vld [vmem:[%s869_s0 + $0x8] sm:$0xff] }
   0x8   :  { %128 = vmatprep.mubr.f32.mxu0 %v752_v25 }
   0x9   :  { %575 = vmatpush3.bf16.msra.mxu0 %v574_v13 }
   0xa   :  { %577 = vmatprep.subr.bf16.mxu0 %v576_v14 }
   0xb   :  { %13 = vsyncpa [#allocation3], 0  ;;  %v582_v26 = vpack.c.bf16 %v39_v22, %v38_v21  ;;  %v584_v27 = vpack.c.bf16 %v57_v24, %v56_v23  ;;  %v40_v28 = vld [vmem:[%s870_s1 + $0x40] sm:$0xff]  ;;  %v41_v29 = vld [vmem:[%s870_s1 + $0x48] sm:$0xff]  ;;  %vm138_vm0 = vcmask 64512   ;;  %vm234_vm1 = vcmask 130048  }
   0xc   :  { %v58_v30 = vld [vmem:[%s870_s1 + $0xd0] sm:$0xff]  ;;  %v59_v31 = vld [vmem:[%s870_s1 + $0xd8] sm:$0xff]  ;;  %v586_v32 = vpack.c.bf16 %v41_v29, %v40_v28  ;;  %v60_v36 = vld [vmem:[%s870_s1 + $0xe0] sm:$0xff]  ;;  %v647_v15 = vmov 0.0   ;;  %s648_s9 = smov 112  }
   0xd   :  { %579 = vmatpush3.bf16.msra.mxu0 %v578_v19  ;;  %v588_v33 = vpack.c.bf16 %v59_v31, %v58_v30  ;;  %v42_v34 = vld [vmem:[%s870_s1 + $0x50] sm:$0xff]  ;;  %v43_v35 = vld [vmem:[%s870_s1 + $0x58] sm:$0xff]  ;;  %v61_v37 = vld [vmem:[%s870_s1 + $0xe8] sm:$0xff] }
   0xe   :  { %581 = vmatprep.subr.bf16.mxu0 %v580_v20  ;;  %v590_v38 = vpack.c.bf16 %v43_v35, %v42_v34  ;;  %v592_v39 = vpack.c.bf16 %v61_v37, %v60_v36  ;;  %v44_v40 = vld [vmem:[%s870_s1 + $0x60] sm:$0xff]  ;;  %v45_v41 = vld [vmem:[%s870_s1 + $0x68] sm:$0xff]  ;;  %v62_v42 = vld [vmem:[%s870_s1 + $0xf0] sm:$0xff] }
   0xf   :  { %v63_v43 = vld [vmem:[%s870_s1 + $0xf8] sm:$0xff]  ;;  %v594_v44 = vpack.c.bf16 %v45_v41, %v44_v40  ;;  %v46_v46 = vld [vmem:[%s870_s1 + $0x70] sm:$0xff]  ;;  %v800_v49 = vld [vmem:[%s869_s0] sm:$0xff]  ;;  %s649_s0 = smov [#allocation2]  }
  0x10   :  { %v596_v45 = vpack.c.bf16 %v63_v43, %v62_v42  ;;  %v47_v47 = vld [vmem:[%s870_s1 + $0x78] sm:$0xff]  ;;  %v134_v50 = vld [vmem:[%s873_s4] sm:$0xff]  ;;  %v135_v54 = vld [vmem:[%s873_s4 + $0x8] sm:$0xff]  ;;  %s498_s10 = sshll.u32 %s649_s0, 4  ;;  %s499_s10 = int_to_ptr.vmem [resolvable:$true] %s498_s10 }
  0x11   :  { %583 = vmatpush3.bf16.msra.mxu0 %v582_v26  ;;  %v598_v48 = vpack.c.bf16 %v47_v47, %v46_v46  ;;  %558 = vmatprep.mubr.msk.f32.mxu1 %vm138_vm0, %v134_v50  ;;  %v230_v55 = vld [vmem:[%s875_s6] sm:$0xff]  ;;  %v137_v56 = vld [vmem:[%s874_s5 + $0x8] sm:$0xff]  ;;  %v331_v11 = vld [vmem:[%s871_s2 + $0x18] sm:$0xff]  ;;  %p628_p1 = scmp.lt.s32.totalorder %s499_s10, %s499_s10 }
  0x12   :  { %585 = vmatprep.subr.bf16.mxu0 %v584_v27  ;;  %v136_v57 = vld [vmem:[%s874_s5] sm:$0xff]  ;;  %v231_v9 = vld [vmem:[%s875_s6 + $0x8] sm:$0xff]  ;;  %v330_v14 = vld [vmem:[%s871_s2 + $0x10] sm:$0xff] }
  0x13   :  { %v329_v10 = vld [vmem:[%s871_s2 + $0x8] sm:$0xff]  ;;  %v328_v12 = vld [vmem:[%s871_s2] sm:$0xff]  ;;  %v409_v18 = vld [vmem:[%s872_s3 + $0x18] sm:$0xff] }
  0x14   :  { %v604_v13 = vpack.c.bf16 %v331_v11, %v329_v10  ;;  %v606_v16 = vpack.c.bf16 %v330_v14, %v328_v12  ;;  %v407_v17 = vld [vmem:[%s872_s3 + $0x8] sm:$0xff]  ;;  %v232_v21 = vld [vmem:[%s876_s7] sm:$0xff]  ;;  %v408_v34 = vld [vmem:[%s872_s3 + $0x10] sm:$0xff] }
  0x15   :  { %587 = vmatpush3.bf16.msra.mxu0 %v586_v32  ;;  %v608_v19 = vpack.c.bf16 %v409_v18, %v407_v17  ;;  %v233_v20 = vld [vmem:[%s876_s7 + $0x8] sm:$0xff] }
  0x16   :  { %589 = vmatprep.subr.bf16.mxu0 %v588_v33  ;;  %v406_v33 = vld [vmem:[%s872_s3] sm:$0xff]  ;;  %s623_s3 = scalar_lea.vmem %s499_s10, 256 }
  0x17   :  { %v610_v35 = vpack.c.bf16 %v408_v34, %v406_v33  ;;  %p624_p0 = scmp.ne.s32.totalorder %s499_s10, %s623_s3  ;;  %p629_p2 = scmp.lt.s32.totalorder %s623_s3, %s623_s3 }
  0x19   :  { %591 = vmatpush3.bf16.msra.mxu0 %v590_v38  ;;  %p630_p3 = por %p629_p2, %p628_p1 }
  0x1a   :  { %593 = vmatprep.subr.bf16.mxu0 %v592_v39 }
  0x1b   :  { %p631_p4 = pnand %p630_p3, %p624_p0 }
  0x1d   :  { %595 = vmatpush3.bf16.msra.mxu0 %v594_v44 }
  0x1e   :  { %597 = vmatprep.subr.bf16.mxu0 %v596_v45 }
  0x21   :  { %599 = vmatpush3.bf16.msra.mxu0 %v598_v48 }
  0x24   :  { %129 = vmatmul.mubr.f32.vlgmr.msra.gmra.mrb[0].mxu0 %v800_v49 }
  0xf7   :  { %v546_v51 = vpop.f32.mrb[0].mxu0 }
  0xf8   :  { %v547_v52 = vpop.f32.mrb[1].mxu0 }
  0xf9   :  { %v548_v53 = vadd.f32 %v547_v52, %v546_v51 }
  0xfb   :  { %556 = vmatprep.subr.mxu1 %v548_v53 }
  0xfc   :  { %557 = vmatpush3.msra.mxu1 %v548_v53 }
  0xfd   :  { %559 = vmatmul.mubr.msk.f32.vlgmr.msra.gmra.mrb[0].mxu1 %vm138_vm0, %v135_v54 }
  0xfe   :  { %565 = vmatprep.mubr.msk.f32.mxu1 %vm234_vm1, %v230_v55 }
 0x1d0   :  { %v560_v58 = vpop.f32.mrb[0].mxu1 }
 0x1d1   :  { %v217_v59 = vadd.f32 %v560_v58, %v137_v56  ;;  %v211_v60 = vpop.f32.mrb[1].mxu1 }
 0x1d2   :  { %v212_v61 = vadd.f32 %v211_v60, %v136_v57 }
 0x1d3   :  { %v221_v62 = vadd.f32 3.0, %v217_v59 }
 0x1d4   :  { %v220_v63 = vadd.f32 3.0, %v212_v61 }
 0x1d5   :  { %v223_v0 = vmax.f32 %v221_v62, 0.0 }
 0x1d6   :  { %v222_v1 = vmax.f32 %v220_v63, 0.0 }
 0x1d7   :  { %v225_v2 = vmin.f32 %v223_v0, 6.0 }
 0x1d8   :  { %v224_v3 = vmin.f32 %v222_v1, 6.0 }
 0x1d9   :  { %v227_v4 = vmul.f32 0.16666667, %v225_v2 }
 0x1da   :  { %v226_v5 = vmul.f32 0.16666667, %v224_v3 }
 0x1db   :  { %v229_v6 = vmul.f32 %v227_v4, %v217_v59 }
 0x1dc   :  { %v228_v7 = vmul.f32 %v226_v5, %v212_v61 }
 0x1de   :  { %v600_v8 = vpack.c.bf16 %v229_v6, %v228_v7 }
 0x1e0   :  { %601 = vmatprep.subr.bf16.mxu1 %v600_v8 }
 0x1e1   :  { %603 = vmatpush3.bf16.msra.mxu1 %v600_v8 }
 0x1e2   :  { %605 = vmatprep.subr.bf16.mxu1 %v604_v13 }
 0x1e4   :  { %566 = vmatmul.mubr.msk.f32.vlgmr.msra.gmra.mrb[2].mxu1 %vm234_vm1, %v231_v9 }
 0x1e5   :  { %399 = vmatprep.mubr.f32.mxu1 %v647_v15  ;;  %607 = vmatpush1.bf16.msra.mxu1 %v606_v16 }
 0x1e6   :  { %609 = vmatprep.subr.bf16.mxu1 %v608_v19 }
 0x2b7   :  { %v567_v22 = vpop.f32.mrb[2].mxu1 }
 0x2b8   :  { %v313_v23 = vadd.f32 %v567_v22, %v233_v20  ;;  %v307_v24 = vpop.f32.mrb[3].mxu1 }
 0x2b9   :  { %v308_v26 = vadd.f32 %v307_v24, %v232_v21 }
 0x2ba   :  { %v511_v27 = vmul.f32 -1.442695, %v313_v23 }
 0x2bb   :  { %v510_v28 = vmul.f32 -1.442695, %v308_v26 }
 0x2bc   :  { %615 = vpow2.f32 %v511_v27 }
 0x2bd   :  { %617 = vpow2.f32 %v510_v28 }
 0x2c6   :  { %v616_v29 = vpop.eup %615 }
 0x2c7   :  { %v618_v30 = vpop.eup %617  ;;  %v325_v31 = vadd.f32 1.0, %v616_v29 }
 0x2c8   :  { %v319_v32 = vadd.f32 1.0, %v618_v30 }
 0x2c9   :  { %619 = vrcp.f32 %v325_v31 }
 0x2ca   :  { %621 = vrcp.f32 %v319_v32 }
 0x2d3   :  { %v620_v36 = vpop.eup %619 }
 0x2d4   :  { %v622_v37 = vpop.eup %621  ;;  %411 = vrot.lane.b32.xlu0 %v620_v36, %s648_s9 }
 0x2d5   :  { %512 = vmatmul.mubr.msk.f32.vlgmr.msra.gmra.mrb[4].mxu1 %vm234_vm1, %v622_v37 }
 0x2d6   :  { %611 = vmatpush1.bf16.msra.mxu1 %v610_v35  ;;  %479 = vmatprep.mubr.f32.mxu1 %v647_v15 }
 0x346   :  { %v412_v38 = vpop.permute.xlu0 %411 }
 0x347   :  { %513 = vmatmul.mubr.msk.f32.vlgmr.msra.gmra.mrb[6].mxu1 %vm234_vm1, %v412_v38 }
 0x3a8   :  { %v401_v39 = vpop.f32.mrb[4].mxu1 }
 0x3a9   :  { %v403_v40 = vpop.f32.mrb[5].mxu1  ;;  %v486_v41 = vmul.f32 %v401_v39, %v800_v49 }
 0x3aa   :  { %v487_v42 = vmul.f32 %v403_v40, %v752_v25 }
 0x41a   :  { %v481_v43 = vpop.f32.mrb[6].mxu1 }
 0x41b   :  { %v488_v44 = vmul.f32 %v486_v41, %v481_v43  ;;  %v483_v45 = vpop.f32.mrb[7].mxu1 }
 0x41c   :  { %v489_v46 = vmul.f32 %v487_v42, %v483_v45 }
 0x41d   :  { %490 = vst [vmem:[#allocation2] sm:$0xff] %v488_v44 }
 0x41e   :  { %491 = vst [vmem:[#allocation2 + $0x8] sm:$0xff] %v489_v46 }
 0x41f   :  { %634 = shalt.err (!%p631_p4)
}
 0x420   :  { %s635_s13 = scalar_lea.hbm %s877_s8, 256 }
 0x421   :  { %p636_p5 = scmp.ne.s32.totalorder %s877_s8, %s635_s13  ;;  %p639_p6 = scmp.lt.u32.totalorder %s635_s13, %s877_s8 }
 0x423   :  { %p641_p7 = pnand %p639_p6, %p636_p5 }
 0x425   :  { %644 = shalt.err (!%p641_p7)
}
 0x426   :  { %501 = dma.vmem_to_hbm [thread:$0]  %s499_s10, 256, %s877_s8, [#allocation3]  }
 0x427   :  { %645 = dma.done.wait [#allocation3], 256  }
 0x428   :  { %646 = vsyncadd [#allocation3], 4294967040 }
 0x429   :  { %505 = vsyncpa [#allocation3], 1 }

</bundles_post_ra>
